<compile_context>
chip_gen: v7x
topology: tpu7x:2x2x1
jax: 0.10.0
libtpu: 0.0.40
codegen_flags: <defaults>
</compile_context>

<pallas_src>
import math
import functools

import jax
import jax.numpy as jnp
import numpy as np
from jax.experimental import pallas as pl
from jax.experimental.pallas import tpu as pltpu

# Model hyperparameters (small, consistent with the module's __init__ signature)
EMBED_DIM = 32
NUM_HEADS = 4
FF_DIM = 64
HEAD_DIM = EMBED_DIM // NUM_HEADS
LN_EPS = 1e-5

MAX_TILE_ROWS = 4096


def _layernorm(x, gamma, beta):
    # x: (N, E) f32, gamma/beta: (1, E) f32
    mean = jnp.mean(x, axis=-1, keepdims=True)
    var = jnp.mean((x - mean) * (x - mean), axis=-1, keepdims=True)
    inv = jax.lax.rsqrt(var + LN_EPS)
    return (x - mean) * inv * gamma + beta


def transformer_block_kernel(
    x_ref,        # (Nt, E)     activations at io dtype
    wqkv_ref,     # (E, 3E)     matmul dtype; softmax scale folded into the Q block
    wo_ref,       # (E, E)      matmul dtype
    w1_ref,       # (E, FF)     matmul dtype
    w2_ref,       # (FF, E)     matmul dtype
    vec_ref,      # (8, 128)    packed f32 biases / LayerNorm params
    o_ref,        # (Nt, E)     io dtype
    *, num_heads, seq_len, matmul_dtype,
):
    E = wo_ref.shape[0]
    FF = w1_ref.shape[1]
    H = num_heads
    Hd = E // H
    N = x_ref.shape[0]
    S = seq_len
    Bt = N // S
    md = matmul_dtype

    x = x_ref[...].astype(jnp.float32)       # residual / LayerNorm path in f32
    xm = x.astype(md)                        # MXU operand

    vec = vec_ref[...]                       # (8, 128) f32
    bqkv = vec[0:1, :3 * E]                  # (1, 3E) — q part pre-scaled by 1/sqrt(Hd)
    bo = vec[1:2, :E]
    g1, be1 = vec[2:3, :E], vec[3:4, :E]
    bf1 = vec[4:5, :FF]
    bf2 = vec[5:6, :E]
    g2, be2 = vec[6:7, :E], vec[7:8, :E]

    # --- Fused QKV projection: one (Nt,E)@(E,3E) MXU push --------------------
    qkv = jnp.dot(xm, wqkv_ref[...], preferred_element_type=jnp.float32) + bqkv
    qkv3 = qkv.reshape(Bt, S, 3 * E)         # leading-dim split only (free)

    # --- Attention: batched over batch, static per-head loop -----------------
    attn = jnp.zeros((N, E), jnp.float32)
    for h in range(H):
        lo = h * Hd
        qh = qkv3[:, :, lo:lo + Hd].astype(md)                    # (Bt, S, Hd)
        kh = qkv3[:, :, E + lo:E + lo + Hd].astype(md)
        vh = qkv3[:, :, 2 * E + lo:2 * E + lo + Hd].astype(md)

        s = jnp.einsum("bqd,bkd->bqk", qh, kh,
                       preferred_element_type=jnp.float32)        # (Bt, S, S)
        s = s - jnp.max(s, axis=-1, keepdims=True)
        p = jnp.exp(s)
        p = p / jnp.sum(p, axis=-1, keepdims=True)                # exact softmax

        oh = jnp.einsum("bqk,bkd->bqd", p.astype(md), vh,
                        preferred_element_type=jnp.float32)       # (Bt, S, Hd)
        attn = attn + jnp.dot(oh.reshape(N, Hd).astype(md),
                              wo_ref[lo:lo + Hd, :],
                              preferred_element_type=jnp.float32)
    attn = attn + bo

    # --- Residual + LayerNorm 1 (f32) -----------------------------------------
    x1 = _layernorm(x + attn, g1, be1)

    # --- FeedForward: Linear -> ReLU -> Linear ---------------------------------
    h1 = jnp.dot(x1.astype(md), w1_ref[...], preferred_element_type=jnp.float32) + bf1
    h1 = jnp.maximum(h1, 0.0)
    ff = jnp.dot(h1.astype(md), w2_ref[...], preferred_element_type=jnp.float32) + bf2

    # --- Residual + LayerNorm 2 (f32) ------------------------------------------
    out = _layernorm(x1 + ff, g2, be2)
    o_ref[...] = out.astype(o_ref.dtype)


def make_params(key, embed_dim=EMBED_DIM, ff_dim=FF_DIM):
    ks = jax.random.split(key, 8)

    def lin(k, din, dout):
        w = jax.random.normal(k, (din, dout), jnp.float32) * (1.0 / math.sqrt(din))
        b = jnp.zeros((1, dout), jnp.float32)
        return w, b

    wq, bq = lin(ks[0], embed_dim, embed_dim)
    wk, bk = lin(ks[1], embed_dim, embed_dim)
    wv, bv = lin(ks[2], embed_dim, embed_dim)
    wo, bo = lin(ks[3], embed_dim, embed_dim)
    w1, bf1 = lin(ks[4], embed_dim, ff_dim)
    w2, bf2 = lin(ks[5], ff_dim, embed_dim)
    g1 = jnp.ones((1, embed_dim), jnp.float32)
    be1 = jnp.zeros((1, embed_dim), jnp.float32)
    g2 = jnp.ones((1, embed_dim), jnp.float32)
    be2 = jnp.zeros((1, embed_dim), jnp.float32)
    return [wq, bq, wk, bk, wv, bv, wo, bo, g1, be1, w1, bf1, w2, bf2, g2, be2]


# ------------------------- hardware-aware tile selection -------------------------

def _device_kind():
    try:
        return jax.devices()[0].device_kind.lower()
    except Exception:
        return ""


def _vmem_capacity_bytes():
    try:
        cap = int(pltpu.get_tpu_info().vmem_capacity_bytes)
        if cap > 0:
            return cap
    except Exception:
        pass
    kind = _device_kind()
    if "v7" in kind:
        return 64 * 1024 * 1024
    if "v5" in kind or "v6" in kind:
        return 128 * 1024 * 1024
    return 64 * 1024 * 1024  # conservative default


def _num_tensorcores():
    # v7x has 2 TensorCores per chip; prefer >=2 grid steps there.
    return 2 if "v7" in _device_kind() else 1


def _tile_vmem_bytes(block_b, S, E, FF, H, io_bytes, mat_bytes):
    """Rough per-grid-step VMEM working-set estimate (bytes)."""
    Nt = block_b * S
    f32 = 4
    act = Nt * (7 * E + FF) * f32                 # x, qkv(3E), attn, x1, ff, h1
    scores = 2 * H * block_b * S * S * f32        # per-head s and p (unrolled loop)
    io = 2 * 2 * Nt * E * io_bytes                # double-buffered x / out blocks
    w = 2 * (3 * E * E + E * E + E * FF + FF * E) * mat_bytes + 2 * 8 * 128 * f32
    return act + scores + io + w


def _select_block_b(B, S, E, FF, H, *, budget_bytes, io_bytes, mat_bytes,
                    min_steps=1, max_rows=MAX_TILE_ROWS):
    """Largest batch tile whose row count is (8,128)-legal and fits the VMEM budget."""
    divisors = [d for d in range(1, B + 1) if B % d == 0]

    def legal_rows(d):
        # Block sublane dim must be a multiple of 8 OR equal the full array dim.
        return ((d * S) % 8 == 0) or (d == B)

    for need_steps in sorted({min_steps, 1}, reverse=True):
        cands = [d for d in divisors
                 if legal_rows(d)
                 and d * S <= max_rows
                 and (B // d) >= need_steps
                 and _tile_vmem_bytes(d, S, E, FF, H, io_bytes, mat_bytes) <= budget_bytes]
        if cands:
            return max(cands)

    # Fallback: smallest layout-legal tile (d == B is always legal).
    # TODO(synk): add KV/sequence tiling so very long S does not force this path.
    legal = [d for d in divisors if legal_rows(d)]
    return min(legal) if legal else B


# ------------------------------------ wrapper ------------------------------------

def transformer_block(x, params, *, matmul_dtype=jnp.bfloat16,
                      io_dtype=jnp.bfloat16, block_b=None):
    B, S, E = x.shape
    assert E == EMBED_DIM
    (wq, bq, wk, bk, wv, bv, wo, bo,
     g1, be1, w1, bf1, w2, bf2, g2, be2) = params
    FF = w1.shape[1]
    H = NUM_HEADS

    # Fold the 1/sqrt(head_dim) softmax scale into Wq / bq (constant weight fold),
    # and fuse Wq|Wk|Wv into one (E, 3E) weight + one bias row.
    scale = 1.0 / math.sqrt(E // H)
    wqkv = jnp.concatenate(
        [jnp.asarray(wq, jnp.float32) * scale,
         jnp.asarray(wk, jnp.float32),
         jnp.asarray(wv, jnp.float32)], axis=1)                   # (E, 3E)
    bqkv = jnp.concatenate(
        [jnp.asarray(bq, jnp.float32) * scale,
         jnp.asarray(bk, jnp.float32),
         jnp.asarray(bv, jnp.float32)], axis=1)                   # (1, 3E)

    # Pack every small vector into one lane-padded (8, 128) f32 operand (1 DMA).
    def row(v, width=128):
        v = jnp.asarray(v, jnp.float32).reshape(1, -1)
        return jnp.pad(v, ((0, 0), (0, width - v.shape[1])))

    vecs = jnp.concatenate(
        [row(bqkv), row(bo), row(g1), row(be1),
         row(bf1), row(bf2), row(g2), row(be2)], axis=0)          # (8, 128)

    # Weights shipped at the MXU operand dtype (halves weight DMA for bf16).
    mats = [jnp.asarray(w, matmul_dtype) for w in (wqkv, wo, w1, w2)]

    # Generation-aware VMEM limit and tile selection.
    vmem_cap = _vmem_capacity_bytes()
    vmem_limit = int(min((3 * vmem_cap) // 4, 96 * 1024 * 1024))   # ~48 MiB v7x, ~96 MiB v5e/v6e
    io_bytes = np.dtype(io_dtype).itemsize
    mat_bytes = np.dtype(matmul_dtype).itemsize
    if block_b is None:
        block_b = _select_block_b(
            B, S, E, FF, H,
            budget_bytes=int(vmem_limit * 0.6),
            io_bytes=io_bytes, mat_bytes=mat_bytes,
            min_steps=_num_tensorcores(), max_rows=MAX_TILE_ROWS)
    assert B % block_b == 0
    grid = (B // block_b,)
    Nt = block_b * S

    # Flatten (B, S, E) -> (B*S, E): contiguous row slab per grid step, and every
    # in-kernel reshape is a pure leading-dim split/merge.  Activations cross the
    # pallas_call boundary at io_dtype (bf16 by default) to halve HBM traffic.
    x2d = x.reshape(B * S, E).astype(io_dtype)

    kernel = functools.partial(
        transformer_block_kernel,
        num_heads=H, seq_len=S, matmul_dtype=matmul_dtype)

    x_spec = pl.BlockSpec((Nt, E), lambda b: (b, 0))
    mat_specs = [pl.BlockSpec(m.shape, lambda b: (0, 0)) for m in mats]
    vec_spec = pl.BlockSpec(vecs.shape, lambda b: (0, 0))

    out2d = pl.pallas_call(
        kernel,
        out_shape=jax.ShapeDtypeStruct((B * S, E), io_dtype),
        grid_spec=pltpu.PrefetchScalarGridSpec(
            num_scalar_prefetch=0,
            grid=grid,
            in_specs=[x_spec] + mat_specs + [vec_spec],
            out_specs=pl.BlockSpec((Nt, E), lambda b: (b, 0)),
        ),
        compiler_params=pltpu.CompilerParams(
            dimension_semantics=("parallel",),
            vmem_limit_bytes=vmem_limit,
        ),
    )(x2d, *mats, vecs)
    return out2d.reshape(B, S, E).astype(x.dtype)


def transformer_block_ref(x, params):
    """Pure-JAX f32 reference for correctness checking."""
    (wq, bq, wk, bk, wv, bv, wo, bo, g1, be1, w1, bf1, w2, bf2, g2, be2) = params

    def ln(x, g, b):
        m = jnp.mean(x, axis=-1, keepdims=True)
        v = jnp.mean((x - m) ** 2, axis=-1, keepdims=True)
        return (x - m) / jnp.sqrt(v + LN_EPS) * g + b

    B, S, E = x.shape
    q = x @ wq + bq
    k = x @ wk + bk
    v = x @ wv + bv
    qh = q.reshape(B, S, NUM_HEADS, HEAD_DIM).transpose(0, 2, 1, 3)
    kh = k.reshape(B, S, NUM_HEADS, HEAD_DIM).transpose(0, 2, 1, 3)
    vh = v.reshape(B, S, NUM_HEADS, HEAD_DIM).transpose(0, 2, 1, 3)
    s = jnp.einsum("bhqd,bhkd->bhqk", qh, kh) / math.sqrt(HEAD_DIM)
    p = jax.nn.softmax(s, axis=-1)
    o = jnp.einsum("bhqk,bhkd->bhqd", p, vh).transpose(0, 2, 1, 3).reshape(B, S, E)
    attn = o @ wo + bo
    x1 = ln(x + attn, g1, be1)
    ff = jnp.maximum(x1 @ w1 + bf1, 0.0) @ w2 + bf2
    return ln(x1 + ff, g2, be2)


if __name__ == "__main__":
    key = jax.random.PRNGKey(0)
    kx, kp, kx2 = jax.random.split(key, 3)

    params = make_params(kp)

    # Small shape consistent with the module.
    B, S = 2, 8
    x = jax.random.normal(kx, (B, S, EMBED_DIM), jnp.float32)
    ref = transformer_block_ref(x, params)

    # Tight numerics check: f32 I/O + f32 MXU operands.
    out_f32 = jax.block_until_ready(
        transformer_block(x, params, matmul_dtype=jnp.float32, io_dtype=jnp.float32))
    np.testing.assert_allclose(np.asarray(out_f32), np.asarray(ref),
                               rtol=1e-2, atol=1e-2)

    # Default fast path: bf16 activation I/O + bf16 MXU operands (f32 accumulation).
    out_fast = jax.block_until_ready(transformer_block(x, params))
    np.testing.assert_allclose(np.asarray(out_fast), np.asarray(ref),
                               rtol=5e-2, atol=5e-2)

    # Larger shape to exercise the big-row-tile / multi-step grid path.
    B2, S2 = 8, 128
    x2 = jax.random.normal(kx2, (B2, S2, EMBED_DIM), jnp.float32)
    ref2 = transformer_block_ref(x2, params)
    out2 = jax.block_until_ready(transformer_block(x2, params))
    np.testing.assert_allclose(np.asarray(out2), np.asarray(ref2),
                               rtol=5e-2, atol=5e-2)

    print("KERNEL_OK")
</pallas_src>

<mosaic_0001>
module attributes {stable_mosaic.version = 11 : i64} {
  func.func @transformer_block_kernel(%arg0: i32, %arg1: memref<16x32xf32, #tpu.memory_space<vmem>>, %arg2: memref<32x96xf32, #tpu.memory_space<vmem>>, %arg3: memref<32x32xf32, #tpu.memory_space<vmem>>, %arg4: memref<32x64xf32, #tpu.memory_space<vmem>>, %arg5: memref<64x32xf32, #tpu.memory_space<vmem>>, %arg6: memref<8x128xf32, #tpu.memory_space<vmem>>, %arg7: memref<16x32xf32, #tpu.memory_space<vmem>>) attributes {dimension_semantics = [#tpu.dimension_semantics<parallel>], iteration_bounds = array<i64: 1>, scalar_prefetch = 0 : i64, scratch_operands = 0 : i64, tpu.core_type = #tpu.core_type<tc>, window_params = [{transform_indices = @transform_0, window_bounds = array<i64: 16, 32>}, {pipeline_mode = #tpu.pipeline_mode<synchronous>, transform_indices = @transform_1, window_bounds = array<i64: 32, 96>}, {pipeline_mode = #tpu.pipeline_mode<synchronous>, transform_indices = @transform_2, window_bounds = array<i64: 32, 32>}, {pipeline_mode = #tpu.pipeline_mode<synchronous>, transform_indices = @transform_3, window_bounds = array<i64: 32, 64>}, {pipeline_mode = #tpu.pipeline_mode<synchronous>, transform_indices = @transform_4, window_bounds = array<i64: 64, 32>}, {pipeline_mode = #tpu.pipeline_mode<synchronous>, transform_indices = @transform_5, window_bounds = array<i64: 8, 128>}, {transform_indices = @transform_6, window_bounds = array<i64: 16, 32>}]} {
    %c0 = arith.constant 0 : index
    %c0_0 = arith.constant 0 : index
    %0 = vector.load %arg1[%c0, %c0_0] : memref<16x32xf32, #tpu.memory_space<vmem>>, vector<16x32xf32>
    %c0_1 = arith.constant 0 : index
    %c0_2 = arith.constant 0 : index
    %1 = vector.load %arg6[%c0_1, %c0_2] : memref<8x128xf32, #tpu.memory_space<vmem>>, vector<8x128xf32>
    %2 = vector.extract_strided_slice %1 {offsets = [0, 0], sizes = [1, 96], strides = [1, 1]} : vector<8x128xf32> to vector<1x96xf32>
    %3 = vector.extract_strided_slice %1 {offsets = [1, 0], sizes = [1, 32], strides = [1, 1]} : vector<8x128xf32> to vector<1x32xf32>
    %4 = vector.extract_strided_slice %1 {offsets = [2, 0], sizes = [1, 32], strides = [1, 1]} : vector<8x128xf32> to vector<1x32xf32>
    %5 = vector.extract_strided_slice %1 {offsets = [3, 0], sizes = [1, 32], strides = [1, 1]} : vector<8x128xf32> to vector<1x32xf32>
    %6 = vector.extract_strided_slice %1 {offsets = [4, 0], sizes = [1, 64], strides = [1, 1]} : vector<8x128xf32> to vector<1x64xf32>
    %7 = vector.extract_strided_slice %1 {offsets = [5, 0], sizes = [1, 32], strides = [1, 1]} : vector<8x128xf32> to vector<1x32xf32>
    %8 = vector.extract_strided_slice %1 {offsets = [6, 0], sizes = [1, 32], strides = [1, 1]} : vector<8x128xf32> to vector<1x32xf32>
    %9 = vector.extract_strided_slice %1 {offsets = [7, 0], sizes = [1, 32], strides = [1, 1]} : vector<8x128xf32> to vector<1x32xf32>
    %c0_3 = arith.constant 0 : index
    %c0_4 = arith.constant 0 : index
    %10 = vector.load %arg2[%c0_3, %c0_4] : memref<32x96xf32, #tpu.memory_space<vmem>>, vector<32x96xf32>
    %cst = arith.constant dense<0.000000e+00> : vector<16x96xf32>
    %11 = tpu.matmul %0, %10, %cst {dimension_numbers = #tpu.dot_dimension_numbers<[1], [0], [0], [1], [0, 0, 1, 1], [], []>} : vector<16x32xf32>, vector<32x96xf32>, vector<16x96xf32> -> vector<16x96xf32>
    %12 = vector.broadcast %2 : vector<1x96xf32> to vector<16x96xf32>
    %13 = arith.addf %11, %12 : vector<16x96xf32>
    %14 = vector.shape_cast %13 : vector<16x96xf32> to vector<2x8x96xf32>
    %cst_5 = arith.constant 0.000000e+00 : f32
    %15 = vector.broadcast %cst_5 : f32 to vector<16x32xf32>
    %16 = vector.extract_strided_slice %14 {offsets = [0, 0, 0], sizes = [2, 8, 8], strides = [1, 1, 1]} : vector<2x8x96xf32> to vector<2x8x8xf32>
    %17 = vector.extract_strided_slice %14 {offsets = [0, 0, 32], sizes = [2, 8, 8], strides = [1, 1, 1]} : vector<2x8x96xf32> to vector<2x8x8xf32>
    %18 = vector.extract_strided_slice %14 {offsets = [0, 0, 64], sizes = [2, 8, 8], strides = [1, 1, 1]} : vector<2x8x96xf32> to vector<2x8x8xf32>
    "tpu.trace_start"() <{level = 10 : i32, message = "bqd,bkd->bqk"}> : () -> ()
    %cst_6 = arith.constant dense<0.000000e+00> : vector<2x8x8xf32>
    %19 = tpu.matmul %16, %17, %cst_6 {dimension_numbers = #tpu.dot_dimension_numbers<[2], [2], [1], [1], [0, 0, 0, 1, 1, 1], [0], [0]>} : vector<2x8x8xf32>, vector<2x8x8xf32>, vector<2x8x8xf32> -> vector<2x8x8xf32>
    "tpu.trace_stop"() : () -> ()
    %cst_7 = arith.constant dense<0xFF800000> : vector<2x8xf32>
    %20 = vector.multi_reduction <maximumf>, %19, %cst_7 [2] : vector<2x8x8xf32> to vector<2x8xf32>
    %21 = vector.shape_cast %20 : vector<2x8xf32> to vector<2x8x1xf32>
    %22 = vector.broadcast %21 : vector<2x8x1xf32> to vector<2x8x8xf32>
    %23 = arith.subf %19, %22 : vector<2x8x8xf32>
    %24 = math.exp %23 : vector<2x8x8xf32>
    %cst_8 = arith.constant dense<0.000000e+00> : vector<2x8xf32>
    %25 = vector.multi_reduction <add>, %24, %cst_8 [2] : vector<2x8x8xf32> to vector<2x8xf32>
    %26 = vector.shape_cast %25 : vector<2x8xf32> to vector<2x8x1xf32>
    %27 = vector.broadcast %26 : vector<2x8x1xf32> to vector<2x8x8xf32>
    %28 = arith.divf %24, %27 : vector<2x8x8xf32>
    "tpu.trace_start"() <{level = 10 : i32, message = "bqk,bkd->bqd"}> : () -> ()
    %cst_9 = arith.constant dense<0.000000e+00> : vector<2x8x8xf32>
    %29 = tpu.matmul %28, %18, %cst_9 {dimension_numbers = #tpu.dot_dimension_numbers<[2], [1], [1], [2], [0, 0, 0, 1, 1, 2], [0], [0]>} : vector<2x8x8xf32>, vector<2x8x8xf32>, vector<2x8x8xf32> -> vector<2x8x8xf32>
    "tpu.trace_stop"() : () -> ()
    %30 = vector.shape_cast %29 : vector<2x8x8xf32> to vector<16x8xf32>
    %c0_10 = arith.constant 0 : index
    %c0_11 = arith.constant 0 : index
    %31 = vector.load %arg3[%c0_10, %c0_11] : memref<32x32xf32, #tpu.memory_space<vmem>>, vector<8x32xf32>
    %cst_12 = arith.constant dense<0.000000e+00> : vector<16x32xf32>
    %32 = tpu.matmul %30, %31, %cst_12 {dimension_numbers = #tpu.dot_dimension_numbers<[1], [0], [0], [1], [0, 0, 1, 1], [], []>} : vector<16x8xf32>, vector<8x32xf32>, vector<16x32xf32> -> vector<16x32xf32>
    %33 = arith.addf %15, %32 : vector<16x32xf32>
    %34 = vector.extract_strided_slice %14 {offsets = [0, 0, 8], sizes = [2, 8, 8], strides = [1, 1, 1]} : vector<2x8x96xf32> to vector<2x8x8xf32>
    %35 = vector.extract_strided_slice %14 {offsets = [0, 0, 40], sizes = [2, 8, 8], strides = [1, 1, 1]} : vector<2x8x96xf32> to vector<2x8x8xf32>
    %36 = vector.extract_strided_slice %14 {offsets = [0, 0, 72], sizes = [2, 8, 8], strides = [1, 1, 1]} : vector<2x8x96xf32> to vector<2x8x8xf32>
    "tpu.trace_start"() <{level = 10 : i32, message = "bqd,bkd->bqk"}> : () -> ()
    %cst_13 = arith.constant dense<0.000000e+00> : vector<2x8x8xf32>
    %37 = tpu.matmul %34, %35, %cst_13 {dimension_numbers = #tpu.dot_dimension_numbers<[2], [2], [1], [1], [0, 0, 0, 1, 1, 1], [0], [0]>} : vector<2x8x8xf32>, vector<2x8x8xf32>, vector<2x8x8xf32> -> vector<2x8x8xf32>
    "tpu.trace_stop"() : () -> ()
    %cst_14 = arith.constant dense<0xFF800000> : vector<2x8xf32>
    %38 = vector.multi_reduction <maximumf>, %37, %cst_14 [2] : vector<2x8x8xf32> to vector<2x8xf32>
    %39 = vector.shape_cast %38 : vector<2x8xf32> to vector<2x8x1xf32>
    %40 = vector.broadcast %39 : vector<2x8x1xf32> to vector<2x8x8xf32>
    %41 = arith.subf %37, %40 : vector<2x8x8xf32>
    %42 = math.exp %41 : vector<2x8x8xf32>
    %cst_15 = arith.constant dense<0.000000e+00> : vector<2x8xf32>
    %43 = vector.multi_reduction <add>, %42, %cst_15 [2] : vector<2x8x8xf32> to vector<2x8xf32>
    %44 = vector.shape_cast %43 : vector<2x8xf32> to vector<2x8x1xf32>
    %45 = vector.broadcast %44 : vector<2x8x1xf32> to vector<2x8x8xf32>
    %46 = arith.divf %42, %45 : vector<2x8x8xf32>
    "tpu.trace_start"() <{level = 10 : i32, message = "bqk,bkd->bqd"}> : () -> ()
    %cst_16 = arith.constant dense<0.000000e+00> : vector<2x8x8xf32>
    %47 = tpu.matmul %46, %36, %cst_16 {dimension_numbers = #tpu.dot_dimension_numbers<[2], [1], [1], [2], [0, 0, 0, 1, 1, 2], [0], [0]>} : vector<2x8x8xf32>, vector<2x8x8xf32>, vector<2x8x8xf32> -> vector<2x8x8xf32>
    "tpu.trace_stop"() : () -> ()
    %48 = vector.shape_cast %47 : vector<2x8x8xf32> to vector<16x8xf32>
    %c8 = arith.constant 8 : index
    %c0_17 = arith.constant 0 : index
    %49 = vector.load %arg3[%c8, %c0_17] : memref<32x32xf32, #tpu.memory_space<vmem>>, vector<8x32xf32>
    %cst_18 = arith.constant dense<0.000000e+00> : vector<16x32xf32>
    %50 = tpu.matmul %48, %49, %cst_18 {dimension_numbers = #tpu.dot_dimension_numbers<[1], [0], [0], [1], [0, 0, 1, 1], [], []>} : vector<16x8xf32>, vector<8x32xf32>, vector<16x32xf32> -> vector<16x32xf32>
    %51 = arith.addf %33, %50 : vector<16x32xf32>
    %52 = vector.extract_strided_slice %14 {offsets = [0, 0, 16], sizes = [2, 8, 8], strides = [1, 1, 1]} : vector<2x8x96xf32> to vector<2x8x8xf32>
    %53 = vector.extract_strided_slice %14 {offsets = [0, 0, 48], sizes = [2, 8, 8], strides = [1, 1, 1]} : vector<2x8x96xf32> to vector<2x8x8xf32>
    %54 = vector.extract_strided_slice %14 {offsets = [0, 0, 80], sizes = [2, 8, 8], strides = [1, 1, 1]} : vector<2x8x96xf32> to vector<2x8x8xf32>
    "tpu.trace_start"() <{level = 10 : i32, message = "bqd,bkd->bqk"}> : () -> ()
    %cst_19 = arith.constant dense<0.000000e+00> : vector<2x8x8xf32>
    %55 = tpu.matmul %52, %53, %cst_19 {dimension_numbers = #tpu.dot_dimension_numbers<[2], [2], [1], [1], [0, 0, 0, 1, 1, 1], [0], [0]>} : vector<2x8x8xf32>, vector<2x8x8xf32>, vector<2x8x8xf32> -> vector<2x8x8xf32>
    "tpu.trace_stop"() : () -> ()
    %cst_20 = arith.constant dense<0xFF800000> : vector<2x8xf32>
    %56 = vector.multi_reduction <maximumf>, %55, %cst_20 [2] : vector<2x8x8xf32> to vector<2x8xf32>
    %57 = vector.shape_cast %56 : vector<2x8xf32> to vector<2x8x1xf32>
    %58 = vector.broadcast %57 : vector<2x8x1xf32> to vector<2x8x8xf32>
    %59 = arith.subf %55, %58 : vector<2x8x8xf32>
    %60 = math.exp %59 : vector<2x8x8xf32>
    %cst_21 = arith.constant dense<0.000000e+00> : vector<2x8xf32>
    %61 = vector.multi_reduction <add>, %60, %cst_21 [2] : vector<2x8x8xf32> to vector<2x8xf32>
    %62 = vector.shape_cast %61 : vector<2x8xf32> to vector<2x8x1xf32>
    %63 = vector.broadcast %62 : vector<2x8x1xf32> to vector<2x8x8xf32>
    %64 = arith.divf %60, %63 : vector<2x8x8xf32>
    "tpu.trace_start"() <{level = 10 : i32, message = "bqk,bkd->bqd"}> : () -> ()
    %cst_22 = arith.constant dense<0.000000e+00> : vector<2x8x8xf32>
    %65 = tpu.matmul %64, %54, %cst_22 {dimension_numbers = #tpu.dot_dimension_numbers<[2], [1], [1], [2], [0, 0, 0, 1, 1, 2], [0], [0]>} : vector<2x8x8xf32>, vector<2x8x8xf32>, vector<2x8x8xf32> -> vector<2x8x8xf32>
    "tpu.trace_stop"() : () -> ()
    %66 = vector.shape_cast %65 : vector<2x8x8xf32> to vector<16x8xf32>
    %c16 = arith.constant 16 : index
    %c0_23 = arith.constant 0 : index
    %67 = vector.load %arg3[%c16, %c0_23] : memref<32x32xf32, #tpu.memory_space<vmem>>, vector<8x32xf32>
    %cst_24 = arith.constant dense<0.000000e+00> : vector<16x32xf32>
    %68 = tpu.matmul %66, %67, %cst_24 {dimension_numbers = #tpu.dot_dimension_numbers<[1], [0], [0], [1], [0, 0, 1, 1], [], []>} : vector<16x8xf32>, vector<8x32xf32>, vector<16x32xf32> -> vector<16x32xf32>
    %69 = arith.addf %51, %68 : vector<16x32xf32>
    %70 = vector.extract_strided_slice %14 {offsets = [0, 0, 24], sizes = [2, 8, 8], strides = [1, 1, 1]} : vector<2x8x96xf32> to vector<2x8x8xf32>
    %71 = vector.extract_strided_slice %14 {offsets = [0, 0, 56], sizes = [2, 8, 8], strides = [1, 1, 1]} : vector<2x8x96xf32> to vector<2x8x8xf32>
    %72 = vector.extract_strided_slice %14 {offsets = [0, 0, 88], sizes = [2, 8, 8], strides = [1, 1, 1]} : vector<2x8x96xf32> to vector<2x8x8xf32>
    "tpu.trace_start"() <{level = 10 : i32, message = "bqd,bkd->bqk"}> : () -> ()
    %cst_25 = arith.constant dense<0.000000e+00> : vector<2x8x8xf32>
    %73 = tpu.matmul %70, %71, %cst_25 {dimension_numbers = #tpu.dot_dimension_numbers<[2], [2], [1], [1], [0, 0, 0, 1, 1, 1], [0], [0]>} : vector<2x8x8xf32>, vector<2x8x8xf32>, vector<2x8x8xf32> -> vector<2x8x8xf32>
    "tpu.trace_stop"() : () -> ()
    %cst_26 = arith.constant dense<0xFF800000> : vector<2x8xf32>
    %74 = vector.multi_reduction <maximumf>, %73, %cst_26 [2] : vector<2x8x8xf32> to vector<2x8xf32>
    %75 = vector.shape_cast %74 : vector<2x8xf32> to vector<2x8x1xf32>
    %76 = vector.broadcast %75 : vector<2x8x1xf32> to vector<2x8x8xf32>
    %77 = arith.subf %73, %76 : vector<2x8x8xf32>
    %78 = math.exp %77 : vector<2x8x8xf32>
    %cst_27 = arith.constant dense<0.000000e+00> : vector<2x8xf32>
    %79 = vector.multi_reduction <add>, %78, %cst_27 [2] : vector<2x8x8xf32> to vector<2x8xf32>
    %80 = vector.shape_cast %79 : vector<2x8xf32> to vector<2x8x1xf32>
    %81 = vector.broadcast %80 : vector<2x8x1xf32> to vector<2x8x8xf32>
    %82 = arith.divf %78, %81 : vector<2x8x8xf32>
    "tpu.trace_start"() <{level = 10 : i32, message = "bqk,bkd->bqd"}> : () -> ()
    %cst_28 = arith.constant dense<0.000000e+00> : vector<2x8x8xf32>
    %83 = tpu.matmul %82, %72, %cst_28 {dimension_numbers = #tpu.dot_dimension_numbers<[2], [1], [1], [2], [0, 0, 0, 1, 1, 2], [0], [0]>} : vector<2x8x8xf32>, vector<2x8x8xf32>, vector<2x8x8xf32> -> vector<2x8x8xf32>
    "tpu.trace_stop"() : () -> ()
    %84 = vector.shape_cast %83 : vector<2x8x8xf32> to vector<16x8xf32>
    %c24 = arith.constant 24 : index
    %c0_29 = arith.constant 0 : index
    %85 = vector.load %arg3[%c24, %c0_29] : memref<32x32xf32, #tpu.memory_space<vmem>>, vector<8x32xf32>
    %cst_30 = arith.constant dense<0.000000e+00> : vector<16x32xf32>
    %86 = tpu.matmul %84, %85, %cst_30 {dimension_numbers = #tpu.dot_dimension_numbers<[1], [0], [0], [1], [0, 0, 1, 1], [], []>} : vector<16x8xf32>, vector<8x32xf32>, vector<16x32xf32> -> vector<16x32xf32>
    %87 = arith.addf %69, %86 : vector<16x32xf32>
    %88 = vector.broadcast %3 : vector<1x32xf32> to vector<16x32xf32>
    %89 = arith.addf %87, %88 : vector<16x32xf32>
    %90 = arith.addf %0, %89 : vector<16x32xf32>
    %cst_31 = arith.constant dense<0.000000e+00> : vector<16xf32>
    %91 = vector.multi_reduction <add>, %90, %cst_31 [1] : vector<16x32xf32> to vector<16xf32>
    %92 = vector.shape_cast %91 : vector<16xf32> to vector<16x1xf32>
    %cst_32 = arith.constant 3.200000e+01 : f32
    %93 = vector.broadcast %cst_32 : f32 to vector<16x1xf32>
    %94 = arith.divf %92, %93 : vector<16x1xf32>
    %95 = vector.broadcast %94 : vector<16x1xf32> to vector<16x32xf32>
    %96 = arith.subf %90, %95 : vector<16x32xf32>
    %97 = vector.broadcast %94 : vector<16x1xf32> to vector<16x32xf32>
    %98 = arith.subf %90, %97 : vector<16x32xf32>
    %99 = arith.mulf %96, %98 : vector<16x32xf32>
    %cst_33 = arith.constant dense<0.000000e+00> : vector<16xf32>
    %100 = vector.multi_reduction <add>, %99, %cst_33 [1] : vector<16x32xf32> to vector<16xf32>
    %101 = vector.shape_cast %100 : vector<16xf32> to vector<16x1xf32>
    %cst_34 = arith.constant 3.200000e+01 : f32
    %102 = vector.broadcast %cst_34 : f32 to vector<16x1xf32>
    %103 = arith.divf %101, %102 : vector<16x1xf32>
    %cst_35 = arith.constant 9.99999974E-6 : f32
    %104 = vector.broadcast %cst_35 : f32 to vector<16x1xf32>
    %105 = arith.addf %103, %104 : vector<16x1xf32>
    %106 = math.rsqrt %105 : vector<16x1xf32>
    %107 = vector.broadcast %94 : vector<16x1xf32> to vector<16x32xf32>
    %108 = arith.subf %90, %107 : vector<16x32xf32>
    %109 = vector.broadcast %106 : vector<16x1xf32> to vector<16x32xf32>
    %110 = arith.mulf %108, %109 : vector<16x32xf32>
    %111 = vector.broadcast %4 : vector<1x32xf32> to vector<16x32xf32>
    %112 = arith.mulf %110, %111 : vector<16x32xf32>
    %113 = vector.broadcast %5 : vector<1x32xf32> to vector<16x32xf32>
    %114 = arith.addf %112, %113 : vector<16x32xf32>
    %c0_36 = arith.constant 0 : index
    %c0_37 = arith.constant 0 : index
    %115 = vector.load %arg4[%c0_36, %c0_37] : memref<32x64xf32, #tpu.memory_space<vmem>>, vector<32x64xf32>
    %cst_38 = arith.constant dense<0.000000e+00> : vector<16x64xf32>
    %116 = tpu.matmul %114, %115, %cst_38 {dimension_numbers = #tpu.dot_dimension_numbers<[1], [0], [0], [1], [0, 0, 1, 1], [], []>} : vector<16x32xf32>, vector<32x64xf32>, vector<16x64xf32> -> vector<16x64xf32>
    %117 = vector.broadcast %6 : vector<1x64xf32> to vector<16x64xf32>
    %118 = arith.addf %116, %117 : vector<16x64xf32>
    %cst_39 = arith.constant 0.000000e+00 : f32
    %119 = vector.broadcast %cst_39 : f32 to vector<16x64xf32>
    %120 = arith.maximumf %118, %119 : vector<16x64xf32>
    %c0_40 = arith.constant 0 : index
    %c0_41 = arith.constant 0 : index
    %121 = vector.load %arg5[%c0_40, %c0_41] : memref<64x32xf32, #tpu.memory_space<vmem>>, vector<64x32xf32>
    %cst_42 = arith.constant dense<0.000000e+00> : vector<16x32xf32>
    %122 = tpu.matmul %120, %121, %cst_42 {dimension_numbers = #tpu.dot_dimension_numbers<[1], [0], [0], [1], [0, 0, 1, 1], [], []>} : vector<16x64xf32>, vector<64x32xf32>, vector<16x32xf32> -> vector<16x32xf32>
    %123 = vector.broadcast %7 : vector<1x32xf32> to vector<16x32xf32>
    %124 = arith.addf %122, %123 : vector<16x32xf32>
    %125 = arith.addf %114, %124 : vector<16x32xf32>
    %cst_43 = arith.constant dense<0.000000e+00> : vector<16xf32>
    %126 = vector.multi_reduction <add>, %125, %cst_43 [1] : vector<16x32xf32> to vector<16xf32>
    %127 = vector.shape_cast %126 : vector<16xf32> to vector<16x1xf32>
    %cst_44 = arith.constant 3.200000e+01 : f32
    %128 = vector.broadcast %cst_44 : f32 to vector<16x1xf32>
    %129 = arith.divf %127, %128 : vector<16x1xf32>
    %130 = vector.broadcast %129 : vector<16x1xf32> to vector<16x32xf32>
    %131 = arith.subf %125, %130 : vector<16x32xf32>
    %132 = vector.broadcast %129 : vector<16x1xf32> to vector<16x32xf32>
    %133 = arith.subf %125, %132 : vector<16x32xf32>
    %134 = arith.mulf %131, %133 : vector<16x32xf32>
    %cst_45 = arith.constant dense<0.000000e+00> : vector<16xf32>
    %135 = vector.multi_reduction <add>, %134, %cst_45 [1] : vector<16x32xf32> to vector<16xf32>
    %136 = vector.shape_cast %135 : vector<16xf32> to vector<16x1xf32>
    %cst_46 = arith.constant 3.200000e+01 : f32
    %137 = vector.broadcast %cst_46 : f32 to vector<16x1xf32>
    %138 = arith.divf %136, %137 : vector<16x1xf32>
    %cst_47 = arith.constant 9.99999974E-6 : f32
    %139 = vector.broadcast %cst_47 : f32 to vector<16x1xf32>
    %140 = arith.addf %138, %139 : vector<16x1xf32>
    %141 = math.rsqrt %140 : vector<16x1xf32>
    %142 = vector.broadcast %129 : vector<16x1xf32> to vector<16x32xf32>
    %143 = arith.subf %125, %142 : vector<16x32xf32>
    %144 = vector.broadcast %141 : vector<16x1xf32> to vector<16x32xf32>
    %145 = arith.mulf %143, %144 : vector<16x32xf32>
    %146 = vector.broadcast %8 : vector<1x32xf32> to vector<16x32xf32>
    %147 = arith.mulf %145, %146 : vector<16x32xf32>
    %148 = vector.broadcast %9 : vector<1x32xf32> to vector<16x32xf32>
    %149 = arith.addf %147, %148 : vector<16x32xf32>
    %c0_48 = arith.constant 0 : index
    %c0_49 = arith.constant 0 : index
    %150 = vector.load %arg7[%c0_48, %c0_49] : memref<16x32xf32, #tpu.memory_space<vmem>>, vector<16x32xf32>
    tpu.vector_store %arg7[%c0_48, %c0_49], %149 {strides = array<i32>} : memref<16x32xf32, #tpu.memory_space<vmem>>, vector<16x32xf32>,
    return
  }
  func.func @transform_0(%arg0: i32) -> (i32, i32) {
    %c0_i32 = arith.constant 0 : i32
    %c0_i32_0 = arith.constant 0 : i32
    return %arg0, %c0_i32 : i32, i32
  }
  func.func @transform_1(%arg0: i32) -> (i32, i32) {
    %c0_i32 = arith.constant 0 : i32
    %c0_i32_0 = arith.constant 0 : i32
    %c0_i32_1 = arith.constant 0 : i32
    return %c0_i32, %c0_i32_0 : i32, i32
  }
  func.func @transform_2(%arg0: i32) -> (i32, i32) {
    %c0_i32 = arith.constant 0 : i32
    %c0_i32_0 = arith.constant 0 : i32
    %c0_i32_1 = arith.constant 0 : i32
    return %c0_i32, %c0_i32_0 : i32, i32
  }
  func.func @transform_3(%arg0: i32) -> (i32, i32) {
    %c0_i32 = arith.constant 0 : i32
    %c0_i32_0 = arith.constant 0 : i32
    %c0_i32_1 = arith.constant 0 : i32
    return %c0_i32, %c0_i32_0 : i32, i32
  }
  func.func @transform_4(%arg0: i32) -> (i32, i32) {
    %c0_i32 = arith.constant 0 : i32
    %c0_i32_0 = arith.constant 0 : i32
    %c0_i32_1 = arith.constant 0 : i32
    return %c0_i32, %c0_i32_0 : i32, i32
  }
  func.func @transform_5(%arg0: i32) -> (i32, i32) {
    %c0_i32 = arith.constant 0 : i32
    %c0_i32_0 = arith.constant 0 : i32
    %c0_i32_1 = arith.constant 0 : i32
    return %c0_i32, %c0_i32_0 : i32, i32
  }
  func.func @transform_6(%arg0: i32) -> (i32, i32) {
    %c0_i32 = arith.constant 0 : i32
    %c0_i32_0 = arith.constant 0 : i32
    return %arg0, %c0_i32 : i32, i32
  }
}

</mosaic_0001>

<bundles_post_ra>
// kernel: tpu_custom_call.1
= control target key start
LH: loop header
LB: loop body
LE: loop exit
PB: predicated region body
PF: predicated region fallthrough
CT: control target
= control target key end

     0   :  { %11 = vsyncpa [#allocation3], 0  ;;  %s2782_s0 = inlined_call_operand.hbm [shape: f32[16,32], index: 0, kind: input, shape index: {}]   ;;  %s2783_s1 = inlined_call_operand.vmem [shape: f32[32,96], index: 1, kind: input, shape index: {}]   ;;  %s2784_s2 = inlined_call_operand.vmem [shape: f32[32,32], index: 2, kind: input, shape index: {}]   ;;  %s2785_s3 = inlined_call_operand.vmem [shape: f32[32,64], index: 3, kind: input, shape index: {}]   ;;  %s2786_s4 = inlined_call_operand.vmem [shape: f32[64,32], index: 4, kind: input, shape index: {}]   ;;  %s2787_s5 = inlined_call_operand.vmem [shape: f32[8,128], index: 5, kind: input, shape index: {}]   ;;  %s2788_s6 = inlined_call_operand.hbm [shape: f32[16,32], index: 6, kind: output, shape index: {}]  }
   0x1   :  { %12 = vsyncpa [#allocation4], 0  ;;  %s2461_s21 = smov [#allocation2]   ;;  %s2413_s25 = scalar_lea.hbm %s2782_s0, 256 }
   0x2   :  { %s18_s22 = sshll.u32 %s2461_s21, 4  ;;  %p2414_p0 = scmp.ne.s32.totalorder %s2782_s0, %s2413_s25  ;;  %s19_s22 = int_to_ptr.vmem [resolvable:$true] %s18_s22 }
   0x3   :  { %p2417_p1 = scmp.lt.u32.totalorder %s2413_s25, %s2782_s0 }
   0x5   :  { %p2419_p2 = pnand %p2417_p1, %p2414_p0 }
   0x7   :  { %2422 = shalt.err (!%p2419_p2)
}
   0x8   :  { %s2423_s30 = scalar_lea.vmem %s19_s22, 256  ;;  %p2428_p4 = scmp.lt.s32.totalorder %s19_s22, %s19_s22 }
   0x9   :  { %p2424_p3 = scmp.ne.s32.totalorder %s19_s22, %s2423_s30  ;;  %p2429_p5 = scmp.lt.s32.totalorder %s2423_s30, %s2423_s30 }
   0xb   :  { %p2430_p6 = por %p2429_p5, %p2428_p4 }
   0xd   :  { %p2431_p7 = pnand %p2430_p6, %p2424_p3 }
   0xf   :  { %2434 = shalt.err (!%p2431_p7)
}
  0x10   :  { %s2462_s7 = smov 128   ;;  %s2463_s8 = smov 8  }
  0x11   :  { %24 = dma.hbm_to_vmem [thread:$0]  %s2782_s0, 256, %s19_s22, [#allocation3], %s2462_s7, %s2462_s7, %s2463_s8  }
  0x12   :  { %2457 = dma.done.wait [#allocation3], 256  }
  0x13   :  { %2458 = vsyncadd [#allocation3], 4294967040  ;;  %vm49_vm0 = vcmask 261120   ;;  %v41_v0 = vld [vmem:[%s2783_s1] sm:$0xff]  ;;  %v42_v1 = vld [vmem:[%s2783_s1 + $0x8] sm:$0xff]  ;;  %v2464_v8 = vmov 0.0   ;;  %v45_v9 = vlaneseq }
  0x14   :  { %v43_v2 = vld [vmem:[%s2783_s1 + $0x10] sm:$0xff]  ;;  %v2318_v3 = vpack.c.bf16 %v42_v1, %v41_v0  ;;  %v44_v4 = vld [vmem:[%s2783_s1 + $0x18] sm:$0xff]  ;;  %v2540_v5 = vld [vmem:[#allocation2] sm:$0xff]  ;;  %2198 = vmatprep.subr.mxu0 %v2464_v8  ;;  %vm2465_vm1 = vmmov 0   ;;  %s2466_s19 = smov 96   ;;  %s2467_s20 = smov 64  }
  0x15   :  { %v2322_v6 = vpack.c.bf16 %v44_v4, %v43_v2  ;;  %2185 = vmatprep.mubr.msk.f32.mxu1 %vm49_vm0, %v2540_v5  ;;  %v2544_v7 = vld [vmem:[#allocation2 + $0x8] sm:$0xff]  ;;  %v2550_v10 = vshrl.u32 %v45_v9, 7  ;;  %2200 = vmatprep.mubr.msk.f32.mxu0 %vm2465_vm1, %v2464_v8  ;;  %v2560_v12 = vld [vmem:[%s2787_s5] sm:$0xff]  ;;  %s2468_s21 = smov 120   ;;  %vm134_vm2 = vcmask 64512   ;;  %s2469_s5 = smov 88  }
  0x16   :  { %2319 = vmatprep.subr.bf16.mxu1 %v2318_v3  ;;  %s2470_s22 = smov 80   ;;  %s2471_s23 = smov 56   ;;  %vm1932_vm3 = vcmask 523264  }
  0x17   :  { %2321 = vmatpush3.bf16.msra.mxu1 %v2318_v3  ;;  %v47_v11 = vsub.s32 0, %v2550_v10  ;;  %s2472_s24 = smov 112   ;;  %s2473_s25 = smov 48  }
  0x18   :  { %2323 = vmatprep.subr.bf16.mxu1 %v2322_v6  ;;  %s2474_s26 = smov 72   ;;  %s2475_s27 = smov 104  }
  0x19   :  { %v48_v13 = vrot.slane %v2560_v12, %v47_v11  ;;  %s2476_s12 = smov 40  }
  0x1b   :  { %2325 = vmatpush3.bf16.msra.mxu1 %v2322_v6 }
  0x1c   :  { %2188 = vmatprep.subr.mxu1 %v2464_v8 }
  0x1e   :  { %2186 = vmatmul.mubr.msk.f32.vlgmr.msra.gmra.mrb[0].mxu1 %vm49_vm0, %v2544_v7 }
  0x1f   :  { %2190 = vmatprep.mubr.msk.f32.mxu1 %vm2465_vm1, %v2464_v8 }
  0xf1   :  { %v2187_v14 = vpop.f32.mrb[0].mxu1 }
  0xf2   :  { %v122_v15 = vpop.f32.mrb[1].mxu1  ;;  %v2566_v17 = vadd.f32 %v2187_v14, %v48_v13 }
  0xf3   :  { %v2563_v16 = vadd.f32 %v122_v15, %v48_v13 }
  0xf5   :  { %132 = vrot.lane.b32.xlu0 %v2563_v16, %s2466_s19 }
  0xf9   :  { %210 = vrot.lane.b32.xlu0 %v2566_v17, %s2466_s19 }
  0xfd   :  { %384 = vrot.lane.b32.xlu0 %v2566_v17, %s2467_s20 }
 0x101   :  { %539 = vrot.lane.b32.xlu0 %v2566_v17, %s2468_s21 }
 0x167   :  { %v133_v18 = vpop.permute.xlu0 %132 }
 0x168   :  { %2189 = vmatpush3.xpose.msk.msra.mxu1 %vm134_vm2, %v133_v18 }
 0x169   :  { %2193 = vmatprep.subr.mxu1 %v2464_v8 }
 0x16b   :  { %2191 = vmatmul.mubr.msk.f32.vlgmr.msra.gmra.mrb[2].mxu1 %vm134_vm2, %v2563_v16  ;;  %v211_v19 = vpop.permute.xlu0 %210 }
 0x16c   :  { %2194 = vmatpush3.xpose.msk.msra.mxu1 %vm134_vm2, %v211_v19  ;;  %2195 = vmatprep.mubr.msk.f32.mxu1 %vm2465_vm1, %v2464_v8 }
 0x16d   :  { %2203 = vmatprep.subr.mxu1 %v2464_v8 }
 0x16f   :  { %2196 = vmatmul.mubr.msk.f32.vlgmr.msra.gmra.mrb[4].mxu1 %vm134_vm2, %v2566_v17  ;;  %v385_v20 = vpop.permute.xlu0 %384 }
 0x170   :  { %2204 = vmatpush3.msra.mxu1 %v385_v20  ;;  %2205 = vmatprep.mubr.msk.f32.mxu1 %vm2465_vm1, %v2464_v8 }
 0x171   :  { %2213 = vmatprep.subr.mxu1 %v2464_v8 }
 0x173   :  { %v540_v27 = vpop.permute.xlu0 %539 }
 0x23e   :  { %v205_v21 = vpop.f32.mrb[2].mxu1 }
 0x23f   :  { %v2192_v22 = vpop.f32.mrb[3].mxu1  ;;  %v286_v23 = vsel %vm134_vm2, %v205_v21, -inf }
 0x240   :  { %287 = vmax.xlane.f32.xlu0 %v286_v23  ;;  %v791_v23 = vld [vmem:[%s2784_s2 + $0x8] sm:$0xff] }
 0x242   :  { %v282_v24 = vpop.f32.mrb[4].mxu1 }
 0x243   :  { %v2197_v25 = vpop.f32.mrb[5].mxu1  ;;  %v289_v26 = vsel %vm134_vm2, %v282_v24, -inf }
 0x244   :  { %290 = vmax.xlane.f32.xlu1 %v289_v26 }
 0x256   :  { %308 = vrot.lane.b32.xlu0 %v2563_v16, %s2467_s20 }
 0x25a   :  { %461 = vrot.lane.b32.xlu0 %v2563_v16, %s2468_s21 }
 0x2cd   :  { %v288_v28 = vpop.xlane.xlu0 %287 }
 0x2ce   :  { %v292_v35 = vsub.f32 %v205_v21, %v288_v28 }
 0x2d0   :  { %v294_v36 = vmul.f32 1.442695, %v292_v35 }
 0x2d1   :  { %v291_v29 = vpop.xlane.xlu1 %290  ;;  %v309_v30 = vpop.permute.xlu0 %308 }
 0x2d2   :  { %v293_v31 = vsub.f32 %v282_v24, %v291_v29  ;;  %2199 = vmatpush3.msra.mxu0 %v309_v30  ;;  %v460_v24 = vld [vmem:[%s2784_s2] sm:$0xff] }
 0x2d3   :  { %2208 = vmatprep.subr.mxu0 %v2464_v8 }
 0x2d4   :  { %v296_v32 = vmul.f32 1.442695, %v293_v31 }
 0x2d5   :  { %v462_v47 = vpop.permute.xlu0 %461 }
 0x2d6   :  { %2373 = vpow2.f32 %v296_v32 }
 0x2d7   :  { %2375 = vpow2.f32 %v294_v36 }
 0x2e0   :  { %v2374_v33 = vpop.eup %2373 }
 0x2e1   :  { %v301_v34 = vsel %vm134_vm2, %v2374_v33, 0.0  ;;  %v2376_v37 = vpop.eup %2375 }
 0x2e2   :  { %302 = vadd.xlane.f32.xlu1 %v301_v34  ;;  %v298_v38 = vsel %vm134_vm2, %v2376_v37, 0.0 }
 0x2f3   :  { %541 = vrot.lane.b32.xlu1 %v2566_v17, %s2469_s5 }
 0x317   :  { %299 = vadd.xlane.f32.xlu1 %v298_v38 }
 0x328   :  { %463 = vrot.lane.b32.xlu1 %v2563_v16, %s2469_s5 }
 0x32c   :  { %956 = vrot.lane.b32.xlu1 %v2563_v16, %s2470_s22 }
 0x36f   :  { %v303_v39 = vpop.xlane.xlu1 %302 }
 0x370   :  { %2377 = vrcp.f32 %v303_v39 }
 0x373   :  { %v542_v42 = vpop.permute.xlu1 %541 }
 0x37a   :  { %v2378_v40 = vpop.eup %2377 }
 0x37b   :  { %v307_v41 = vmul.f32 %v2378_v40, %v2374_v33 }
 0x37d   :  { %2206 = vmatmul.mubr.msk.f32.vlgmr.msra.gmra.mrb[6].mxu1 %vm134_vm2, %v307_v41 }
 0x37e   :  { %2214 = vmatpush3.xpose.msk.msra.mxu1 %vm134_vm2, %v542_v42  ;;  %2215 = vmatprep.mubr.msk.f32.mxu1 %vm2465_vm1, %v2464_v8 }
 0x37f   :  { %2223 = vmatprep.subr.mxu1 %v2464_v8 }
 0x381   :  { %2216 = vmatmul.mubr.msk.f32.vlgmr.msra.gmra.mrb[8].mxu1 %vm134_vm2, %v540_v27 }
 0x382   :  { %2225 = vmatprep.mubr.msk.f32.mxu1 %vm2465_vm1, %v2464_v8 }
 0x3a4   :  { %v300_v43 = vpop.xlane.xlu1 %299 }
 0x3a5   :  { %2379 = vrcp.f32 %v300_v43 }
 0x3a8   :  { %v464_v46 = vpop.permute.xlu1 %463 }
 0x3ac   :  { %v957_v13 = vpop.permute.xlu1 %956 }
 0x3af   :  { %v2380_v44 = vpop.eup %2379 }
 0x3b0   :  { %v305_v45 = vmul.f32 %v2380_v44, %v2376_v37 }
 0x3b2   :  { %2201 = vmatmul.mubr.msk.f32.vlgmr.msra.gmra.mrb[0].mxu0 %vm134_vm2, %v305_v45 }
 0x3b3   :  { %2209 = vmatpush3.xpose.msk.msra.mxu0 %vm134_vm2, %v464_v46  ;;  %2210 = vmatprep.mubr.msk.f32.mxu0 %vm2465_vm1, %v2464_v8  ;;  %v1284_v46 = vld [vmem:[%s2784_s2 + $0x10] sm:$0xff] }
 0x3b4   :  { %2218 = vmatprep.subr.mxu0 %v2464_v8 }
 0x3b6   :  { %2211 = vmatmul.mubr.msk.f32.vlgmr.msra.gmra.mrb[2].mxu0 %vm134_vm2, %v462_v47 }
 0x3b7   :  { %2220 = vmatprep.mubr.msk.f32.mxu0 %vm2465_vm1, %v2464_v8 }
 0x450   :  { %v2611_v48 = vpop.f32.mrb[6].mxu1 }
 0x451   :  { %v2207_v49 = vpop.f32.mrb[7].mxu1 }
 0x454   :  { %v613_v50 = vpop.f32.mrb[8].mxu1 }
 0x455   :  { %v2217_v51 = vpop.f32.mrb[9].mxu1  ;;  %v620_v52 = vsel %vm134_vm2, %v613_v50, -inf }
 0x456   :  { %621 = vmax.xlane.f32.xlu0 %v620_v52 }
 0x46c   :  { %715 = vrot.lane.b32.xlu0 %v2566_v17, %s2471_s23 }
 0x470   :  { %954 = vrot.lane.b32.xlu0 %v2563_v16, %s2472_s24 }
 0x474   :  { %1034 = vrot.lane.b32.xlu0 %v2566_v17, %s2470_s22 }
 0x485   :  { %v2618_v53 = vpop.f32.mrb[0].mxu0 }
 0x486   :  { %v2202_v54 = vpop.f32.mrb[1].mxu0 }
 0x489   :  { %v535_v55 = vpop.f32.mrb[2].mxu0 }
 0x48a   :  { %v2212_v56 = vpop.f32.mrb[3].mxu0  ;;  %v617_v57 = vsel %vm134_vm2, %v535_v55, -inf }
 0x493   :  { %618 = vmax.xlane.f32.xlu0 %v617_v57 }
 0x4a9   :  { %639 = vrot.lane.b32.xlu0 %v2563_v16, %s2471_s23 }
 0x4ad   :  { %1132 = vrot.lane.b32.xlu0 %v2563_v16, %s2473_s25 }
 0x4b1   :  { %1370 = vrot.lane.b32.xlu0 %v2563_v16, %s2474_s26 }
 0x4b5   :  { %1448 = vrot.lane.b32.xlu0 %v2566_v17, %s2474_s26 }
 0x4b9   :  { %1368 = vrot.lane.b32.xlu0 %v2563_v16, %s2475_s27 }
 0x4bd   :  { %1446 = vrot.lane.b32.xlu0 %v2566_v17, %s2475_s27 }
 0x4e3   :  { %v622_v58 = vpop.xlane.xlu0 %621 }
 0x4e4   :  { %v624_v59 = vsub.f32 %v613_v50, %v622_v58 }
 0x4e6   :  { %v627_v60 = vmul.f32 1.442695, %v624_v59 }
 0x4e7   :  { %v716_v61 = vpop.permute.xlu0 %715 }
 0x4e8   :  { %2381 = vpow2.f32 %v627_v60  ;;  %2224 = vmatpush3.msra.mxu1 %v716_v61 }
 0x4e9   :  { %2238 = vmatprep.subr.mxu1 %v2464_v8 }
 0x4eb   :  { %v955_v0 = vpop.permute.xlu0 %954 }
 0x4ef   :  { %v1035_v1 = vpop.permute.xlu0 %1034 }
 0x4f2   :  { %v2382_v62 = vpop.eup %2381 }
 0x4f3   :  { %v632_v63 = vsel %vm134_vm2, %v2382_v62, 0.0 }
 0x4f4   :  { %633 = vadd.xlane.f32.xlu1 %v632_v63 }
 0x505   :  { %1032 = vrot.lane.b32.xlu1 %v2566_v17, %s2472_s24 }
 0x520   :  { %v619_v2 = vpop.xlane.xlu0 %618 }
 0x521   :  { %v623_v3 = vsub.f32 %v535_v55, %v619_v2 }
 0x523   :  { %v625_v4 = vmul.f32 1.442695, %v623_v3 }
 0x524   :  { %v640_v6 = vpop.permute.xlu0 %639 }
 0x525   :  { %2383 = vpow2.f32 %v625_v4  ;;  %2219 = vmatpush3.msra.mxu0 %v640_v6 }
 0x526   :  { %2228 = vmatprep.subr.mxu0 %v791_v23 }
 0x528   :  { %v1133_v35 = vpop.permute.xlu0 %1132 }
 0x52c   :  { %v1371_v50 = vpop.permute.xlu0 %1370 }
 0x52f   :  { %v2384_v9 = vpop.eup %2383 }
 0x530   :  { %v629_v11 = vsel %vm134_vm2, %v2384_v9, 0.0  ;;  %v1449_v54 = vpop.permute.xlu0 %1448 }
 0x531   :  { %630 = vadd.xlane.f32.xlu1 %v629_v11 }
 0x534   :  { %v1369_v56 = vpop.permute.xlu0 %1368 }
 0x538   :  { %v1447_v61 = vpop.permute.xlu0 %1446 }
 0x581   :  { %v634_v14 = vpop.xlane.xlu1 %633 }
 0x582   :  { %2385 = vrcp.f32 %v634_v14 }
 0x585   :  { %v1033_v19 = vpop.permute.xlu1 %1032 }
 0x58c   :  { %v2386_v15 = vpop.eup %2385 }
 0x58d   :  { %v638_v18 = vmul.f32 %v2386_v15, %v2382_v62 }
 0x58f   :  { %2226 = vmatmul.mubr.msk.f32.vlgmr.msra.gmra.mrb[10].mxu1 %vm134_vm2, %v638_v18 }
 0x590   :  { %2239 = vmatpush3.xpose.msk.msra.mxu1 %vm134_vm2, %v957_v13  ;;  %2240 = vmatprep.mubr.msk.f32.mxu1 %vm2465_vm1, %v2464_v8 }
 0x591   :  { %2243 = vmatprep.subr.mxu1 %v2464_v8 }
 0x593   :  { %2241 = vmatmul.mubr.msk.f32.vlgmr.msra.gmra.mrb[12].mxu1 %vm134_vm2, %v955_v0 }
 0x594   :  { %2244 = vmatpush3.xpose.msk.msra.mxu1 %vm134_vm2, %v1035_v1  ;;  %2245 = vmatprep.mubr.msk.f32.mxu1 %vm2465_vm1, %v2464_v8 }
 0x595   :  { %2253 = vmatprep.subr.mxu1 %v2464_v8 }
 0x597   :  { %2246 = vmatmul.mubr.msk.f32.vlgmr.msra.gmra.mrb[14].mxu1 %vm134_vm2, %v1033_v19 }
 0x598   :  { %2255 = vmatprep.mubr.msk.f32.mxu1 %vm2465_vm1, %v2464_v8 }
 0x5be   :  { %v631_v20 = vpop.xlane.xlu1 %630 }
 0x5bf   :  { %2387 = vrcp.f32 %v631_v20 }
 0x5c9   :  { %v2388_v21 = vpop.eup %2387 }
 0x5ca   :  { %v636_v22 = vmul.f32 %v2388_v21, %v2384_v9 }
 0x5cc   :  { %2221 = vmatmul.mubr.msk.f32.vlgmr.msra.gmra.mrb[4].mxu0 %vm134_vm2, %v636_v22 }
 0x5cd   :  { %2229 = vmatpush3.msra.mxu0 %v791_v23 }
 0x5ce   :  { %2233 = vmatprep.subr.mxu0 %v460_v24 }
 0x662   :  { %v787_v25 = vpop.f32.mrb[10].mxu1 }
 0x663   :  { %v2227_v26 = vpop.f32.mrb[11].mxu1 }
 0x666   :  { %v1028_v27 = vpop.f32.mrb[12].mxu1 }
 0x667   :  { %v2242_v28 = vpop.f32.mrb[13].mxu1  ;;  %v1110_v29 = vsel %vm134_vm2, %v1028_v27, -inf }
 0x668   :  { %1111 = vmax.xlane.f32.xlu1 %v1110_v29 }
 0x66a   :  { %v1106_v30 = vpop.f32.mrb[14].mxu1 }
 0x66b   :  { %v2247_v31 = vpop.f32.mrb[15].mxu1  ;;  %v1113_v32 = vsel %vm134_vm2, %v1106_v30, -inf }
 0x66c   :  { %1114 = vmax.xlane.f32.xlu1 %v1113_v32  ;;  %v1784_v31 = vsub.s32 1, %v2550_v10 }
 0x66e   :  { %v1785_v32 = vrot.slane %v2560_v12, %v1784_v31 }
 0x69f   :  { %v711_v33 = vpop.f32.mrb[4].mxu0 }
 0x6a0   :  { %v2222_v34 = vpop.f32.mrb[5].mxu0  ;;  %2230 = vmatprep.mubr.msk.f32.mxu0 %vm134_vm2, %v711_v33 }
 0x6a1   :  { %2231 = vmatmul.mubr.msk.f32.vlgmr.msra.gmra.mrb[6].mxu0 %vm134_vm2, %v787_v25 }
 0x6a2   :  { %2235 = vmatprep.mubr.msk.f32.mxu0 %vm134_vm2, %v2618_v53  ;;  %2234 = vmatpush3.msra.mxu0 %v460_v24 }
 0x6a3   :  { %2248 = vmatprep.subr.mxu0 %v2464_v8 }
 0x6a9   :  { %2236 = vmatmul.mubr.msk.f32.vlgmr.msra.gmra.mrb[6].mxu0 %vm134_vm2, %v2611_v48 }
 0x6aa   :  { %2249 = vmatpush3.msra.mxu0 %v1133_v35  ;;  %2250 = vmatprep.mubr.msk.f32.mxu0 %vm2465_vm1, %v2464_v8 }
 0x6ab   :  { %2258 = vmatprep.subr.mxu0 %v1284_v46 }
 0x6f5   :  { %v1112_v36 = vpop.xlane.xlu1 %1111 }
 0x6f6   :  { %v1116_v37 = vsub.f32 %v1028_v27, %v1112_v36 }
 0x6f8   :  { %v1118_v38 = vmul.f32 1.442695, %v1116_v37 }
 0x6f9   :  { %v1115_v39 = vpop.xlane.xlu1 %1114 }
 0x6fa   :  { %2389 = vpow2.f32 %v1118_v38  ;;  %v1117_v40 = vsub.f32 %v1106_v30, %v1115_v39 }
 0x6fc   :  { %v1120_v41 = vmul.f32 1.442695, %v1117_v40 }
 0x6fe   :  { %2391 = vpow2.f32 %v1120_v41 }
 0x704   :  { %v2390_v42 = vpop.eup %2389 }
 0x705   :  { %v1122_v43 = vsel %vm134_vm2, %v2390_v42, 0.0 }
 0x706   :  { %1123 = vadd.xlane.f32.xlu1 %v1122_v43 }
 0x708   :  { %v2392_v44 = vpop.eup %2391 }
 0x709   :  { %v1125_v45 = vsel %vm134_vm2, %v2392_v44, 0.0 }
 0x70a   :  { %1126 = vadd.xlane.f32.xlu1 %v1125_v45 }
 0x71b   :  { %1208 = vrot.lane.b32.xlu1 %v2566_v17, %s2473_s25 }
 0x793   :  { %v1124_v47 = vpop.xlane.xlu1 %1123 }
 0x794   :  { %2393 = vrcp.f32 %v1124_v47 }
 0x797   :  { %v1127_v48 = vpop.xlane.xlu1 %1126 }
 0x798   :  { %2395 = vrcp.f32 %v1127_v48 }
 0x79b   :  { %v1209_v49 = vpop.permute.xlu1 %1208 }
 0x79c   :  { %2254 = vmatpush3.msra.mxu1 %v1209_v49 }
 0x79d   :  { %2263 = vmatprep.subr.mxu1 %v2464_v8 }
 0x79e   :  { %v2394_v51 = vpop.eup %2393 }
 0x79f   :  { %v1129_v52 = vmul.f32 %v2394_v51, %v2390_v42 }
 0x7a1   :  { %2251 = vmatmul.mubr.msk.f32.vlgmr.msra.gmra.mrb[8].mxu0 %vm134_vm2, %v1129_v52  ;;  %v1831_v52 = vld [vmem:[%s2785_s3 + $0x10] sm:$0xff] }
 0x7a2   :  { %v2396_v53 = vpop.eup %2395  ;;  %2259 = vmatpush3.msra.mxu0 %v1284_v46 }
 0x7a3   :  { %v1131_v55 = vmul.f32 %v2396_v53, %v2392_v44  ;;  %2268 = vmatprep.subr.mxu0 %v2464_v8  ;;  %v1832_v53 = vld [vmem:[%s2785_s3 + $0x18] sm:$0xff] }
 0x7a5   :  { %2256 = vmatmul.mubr.msk.f32.vlgmr.msra.gmra.mrb[16].mxu1 %vm134_vm2, %v1131_v55  ;;  %v1920_v55 = vld [vmem:[%s2786_s4] sm:$0xff] }
 0x7a6   :  { %2264 = vmatpush3.xpose.msk.msra.mxu1 %vm134_vm2, %v1371_v50  ;;  %2265 = vmatprep.mubr.msk.f32.mxu1 %vm2465_vm1, %v2464_v8  ;;  %v1830_v50 = vld [vmem:[%s2785_s3 + $0x8] sm:$0xff] }
 0x7a7   :  { %2273 = vmatprep.subr.mxu1 %v2464_v8 }
 0x7a9   :  { %2266 = vmatmul.mubr.msk.f32.vlgmr.msra.gmra.mrb[18].mxu1 %vm134_vm2, %v1369_v56  ;;  %v1921_v56 = vld [vmem:[%s2786_s4 + $0x8] sm:$0xff] }
 0x7aa   :  { %2275 = vmatprep.mubr.msk.f32.mxu1 %vm2465_vm1, %v2464_v8 }
 0x874   :  { %v1204_v57 = vpop.f32.mrb[8].mxu0 }
 0x875   :  { %v2252_v58 = vpop.f32.mrb[9].mxu0  ;;  %2260 = vmatprep.mubr.msk.f32.mxu0 %vm134_vm2, %v1204_v57  ;;  %v1922_v57 = vld [vmem:[%s2786_s4 + $0x10] sm:$0xff] }
 0x876   :  { %v2334_v58 = vpack.c.bf16 %v1921_v56, %v1920_v55 }
 0x878   :  { %v1280_v59 = vpop.f32.mrb[16].mxu1 }
 0x879   :  { %v2257_v60 = vpop.f32.mrb[17].mxu1  ;;  %2261 = vmatmul.mubr.msk.f32.vlgmr.msra.gmra.mrb[6].mxu0 %vm134_vm2, %v1280_v59  ;;  %v1923_v59 = vld [vmem:[%s2786_s4 + $0x18] sm:$0xff] }
 0x87a   :  { %2269 = vmatpush3.xpose.msk.msra.mxu0 %vm134_vm2, %v1449_v54  ;;  %2270 = vmatprep.mubr.msk.f32.mxu0 %vm2465_vm1, %v2464_v8  ;;  %v2330_v54 = vpack.c.bf16 %v1832_v53, %v1831_v52  ;;  %v2338_v60 = vpack.c.bf16 %v1923_v59, %v1922_v57  ;;  %v2044_v57 = vsub.s32 6, %v2550_v10 }
 0x87b   :  { %2278 = vmatprep.subr.mxu0 %v2464_v8 }
 0x87c   :  { %v1442_v62 = vpop.f32.mrb[18].mxu1  ;;  %v2045_v59 = vrot.slane %v2560_v12, %v2044_v57 }
 0x87d   :  { %v2267_v63 = vpop.f32.mrb[19].mxu1  ;;  %2271 = vmatmul.mubr.msk.f32.vlgmr.msra.gmra.mrb[10].mxu0 %vm134_vm2, %v1447_v61  ;;  %v1524_v0 = vsel %vm134_vm2, %v1442_v62, -inf  ;;  %v1924_v61 = vld [vmem:[%s2786_s4 + $0x20] sm:$0xff] }
 0x87e   :  { %1525 = vmax.xlane.f32.xlu1 %v1524_v0  ;;  %2280 = vmatprep.mubr.msk.f32.mxu0 %vm2465_vm1, %v2464_v8 }
 0x90b   :  { %v1526_v1 = vpop.xlane.xlu1 %1525 }
 0x90c   :  { %v1530_v2 = vsub.f32 %v1442_v62, %v1526_v1  ;;  %v1925_v62 = vld [vmem:[%s2786_s4 + $0x28] sm:$0xff] }
 0x90d   :  { %v2342_v63 = vpack.c.bf16 %v1925_v62, %v1924_v61 }
 0x90e   :  { %v1532_v3 = vmul.f32 1.442695, %v1530_v2 }
 0x910   :  { %2397 = vpow2.f32 %v1532_v3 }
 0x91a   :  { %v2398_v11 = vpop.eup %2397 }
 0x91b   :  { %v1536_v13 = vsel %vm134_vm2, %v2398_v11, 0.0 }
 0x950   :  { %v1520_v4 = vpop.f32.mrb[10].mxu0 }
 0x951   :  { %v2272_v6 = vpop.f32.mrb[11].mxu0  ;;  %v1527_v9 = vsel %vm134_vm2, %v1520_v4, -inf }
 0x952   :  { %1528 = vmax.xlane.f32.xlu0 %v1527_v9  ;;  %v1819_v9 = vsub.s32 2, %v2550_v10 }
 0x956   :  { %1537 = vadd.xlane.f32.xlu0 %v1536_v13  ;;  %v1820_v13 = vrot.slane %v2560_v12, %v1819_v9 }
 0x96c   :  { %1546 = vrot.lane.b32.xlu0 %v2563_v16, %s2476_s12  ;;  %v1698_v16 = vld [vmem:[%s2784_s2 + $0x18] sm:$0xff] }
 0x9df   :  { %v1529_v14 = vpop.xlane.xlu0 %1528 }
 0x9e0   :  { %v1531_v15 = vsub.f32 %v1520_v4, %v1529_v14 }
 0x9e2   :  { %v1534_v18 = vmul.f32 1.442695, %v1531_v15 }
 0x9e3   :  { %v1538_v8 = vpop.xlane.xlu0 %1537 }
 0x9e4   :  { %2399 = vpow2.f32 %v1534_v18 }
 0x9e5   :  { %2401 = vrcp.f32 %v1538_v8 }
 0x9e7   :  { %v1547_v19 = vpop.permute.xlu0 %1546 }
 0x9e8   :  { %2274 = vmatpush3.msra.mxu1 %v1547_v19 }
 0x9ee   :  { %v2400_v20 = vpop.eup %2399 }
 0x9ef   :  { %v2402_v21 = vpop.eup %2401  ;;  %v1539_v22 = vsel %vm134_vm2, %v2400_v20, 0.0 }
 0x9f0   :  { %v1543_v23 = vmul.f32 %v2402_v21, %v2398_v11  ;;  %1540 = vadd.xlane.f32.xlu1 %v1539_v22  ;;  %v1825_v11 = vsub.s32 3, %v2550_v10 }
 0x9f2   :  { %2276 = vmatmul.mubr.msk.f32.vlgmr.msra.gmra.mrb[20].mxu1 %vm134_vm2, %v1543_v23  ;;  %v1826_v19 = vrot.slane %v2560_v12, %v1825_v11 }
 0xa01   :  { %1622 = vrot.lane.b32.xlu1 %v2566_v17, %s2476_s12 }
 0xa7d   :  { %v1541_v24 = vpop.xlane.xlu1 %1540 }
 0xa7e   :  { %2403 = vrcp.f32 %v1541_v24  ;;  %v1926_v24 = vld [vmem:[%s2786_s4 + $0x30] sm:$0xff] }
 0xa81   :  { %v1623_v25 = vpop.permute.xlu1 %1622 }
 0xa82   :  { %2279 = vmatpush3.msra.mxu0 %v1623_v25 }
 0xa83   :  { %2283 = vmatprep.subr.mxu0 %v1698_v16 }
 0xa88   :  { %v2404_v26 = vpop.eup %2403 }
 0xa89   :  { %v1545_v27 = vmul.f32 %v2404_v26, %v2400_v20  ;;  %v1835_v26 = vsub.s32 4, %v2550_v10 }
 0xa8b   :  { %2281 = vmatmul.mubr.msk.f32.vlgmr.msra.gmra.mrb[12].mxu0 %vm134_vm2, %v1545_v27  ;;  %v1836_v27 = vrot.slane %v2560_v12, %v1835_v26 }
 0xa8c   :  { %2284 = vmatpush3.msra.mxu0 %v1698_v16  ;;  %v1927_v16 = vld [vmem:[%s2786_s4 + $0x38] sm:$0xff]  ;;  %s2477_s4 = smov [#allocation5]  }
 0xa8d   :  { %2335 = vmatprep.subr.bf16.mxu0 %v2334_v58  ;;  %v2346_v25 = vpack.c.bf16 %v1927_v16, %v1926_v24  ;;  %s2061_s12 = sshll.u32 %s2477_s4, 4  ;;  %s2062_s12 = int_to_ptr.vmem [resolvable:$true] %s2061_s12 }
 0xa8e   :  { %s2435_s13 = scalar_lea.vmem %s2062_s12, 256  ;;  %p2440_p9 = scmp.lt.s32.totalorder %s2062_s12, %s2062_s12 }
 0xa8f   :  { %p2436_p8 = scmp.ne.s32.totalorder %s2062_s12, %s2435_s13  ;;  %p2441_p10 = scmp.lt.s32.totalorder %s2435_s13, %s2435_s13 }
 0xa91   :  { %p2442_p11 = por %p2441_p10, %p2440_p9 }
 0xa93   :  { %p2443_p12 = pnand %p2442_p11, %p2436_p8 }
 0xac5   :  { %v1618_v28 = vpop.f32.mrb[20].mxu1 }
 0xac6   :  { %v2277_v29 = vpop.f32.mrb[21].mxu1  ;;  %2285 = vmatprep.mubr.msk.f32.mxu0 %vm134_vm2, %v1618_v28 }
 0xb5e   :  { %v1694_v30 = vpop.f32.mrb[12].mxu0 }
 0xb5f   :  { %v2282_v17 = vpop.f32.mrb[13].mxu0  ;;  %2286 = vmatmul.mubr.msk.f32.vlgmr.msra.gmra.mrb[6].mxu0 %vm134_vm2, %v1694_v30 }
 0xb60   :  { %2337 = vmatpush3.bf16.msra.mxu0 %v2334_v58  ;;  %v2050_v58 = vsub.s32 7, %v2550_v10 }
 0xb61   :  { %2339 = vmatprep.subr.bf16.mxu0 %v2338_v60 }
 0xb64   :  { %2341 = vmatpush3.bf16.msra.mxu0 %v2338_v60 }
 0xb65   :  { %2343 = vmatprep.subr.bf16.mxu0 %v2342_v63 }
 0xb68   :  { %2345 = vmatpush3.bf16.msra.mxu0 %v2342_v63  ;;  %v2051_v63 = vrot.slane %v2560_v12, %v2050_v58 }
 0xb69   :  { %2347 = vmatprep.subr.bf16.mxu0 %v2346_v25 }
 0xb6c   :  { %2349 = vmatpush3.bf16.msra.mxu0 %v2346_v25 }
 0xc32   :  { %v2287_v33 = vpop.f32.mrb[6].mxu0 }
 0xc33   :  { %v1787_v34 = vadd.f32 %v2287_v33, %v1785_v32  ;;  %v1771_v35 = vpop.f32.mrb[7].mxu0  ;;  %v1930_v33 = vsub.s32 5, %v2550_v10 }
 0xc34   :  { %v1786_v36 = vadd.f32 %v1785_v32, %v1771_v35 }
 0xc35   :  { %v1789_v37 = vadd.f32 %v1787_v34, %v2544_v7  ;;  %v1931_v34 = vrot.slane %v2560_v12, %v1930_v33 }
 0xc36   :  { %v1788_v38 = vadd.f32 %v1786_v36, %v2540_v5  ;;  %v1829_v5 = vld [vmem:[%s2785_s3] sm:$0xff] }
 0xc37   :  { %v1793_v39 = vsel %vm49_vm0, %v1789_v37, 0.0  ;;  %v2326_v51 = vpack.c.bf16 %v1830_v50, %v1829_v5 }
 0xc38   :  { %1794 = vadd.xlane.f32.xlu0 %v1793_v39  ;;  %v1790_v40 = vsel %vm49_vm0, %v1788_v38, 0.0 }
 0xc39   :  { %1791 = vadd.xlane.f32.xlu1 %v1790_v40  ;;  %2327 = vmatprep.subr.bf16.mxu1 %v2326_v51 }
 0xc3a   :  { %2329 = vmatpush3.bf16.msra.mxu1 %v2326_v51 }
 0xc3b   :  { %2331 = vmatprep.subr.bf16.mxu1 %v2330_v54 }
 0xc3e   :  { %2333 = vmatpush3.bf16.msra.mxu1 %v2330_v54 }
 0xcc5   :  { %v1795_v41 = vpop.xlane.xlu0 %1794 }
 0xcc6   :  { %v1798_v42 = vmul.f32 0.03125, %v1795_v41  ;;  %v1792_v43 = vpop.xlane.xlu1 %1791 }
 0xcc7   :  { %v1797_v44 = vmul.f32 0.03125, %v1792_v43 }
 0xcc8   :  { %v1800_v45 = vsub.f32 %v1789_v37, %v1798_v42 }
 0xcc9   :  { %v1799_v46 = vsub.f32 %v1788_v38, %v1797_v44 }
 0xcca   :  { %v1802_v47 = vmul.f32 %v1800_v45, %v1800_v45 }
 0xccb   :  { %v1801_v48 = vmul.f32 %v1799_v46, %v1799_v46 }
 0xccc   :  { %v1806_v49 = vsel %vm49_vm0, %v1802_v47, 0.0 }
 0xccd   :  { %1807 = vadd.xlane.f32.xlu1 %v1806_v49  ;;  %v1803_v7 = vsel %vm49_vm0, %v1801_v48, 0.0 }
 0xcce   :  { %1804 = vadd.xlane.f32.xlu0 %v1803_v7 }
 0xd5a   :  { %v1808_v0 = vpop.xlane.xlu1 %1807 }
 0xd5b   :  { %v1810_v1 = vmul.f32 0.03125, %v1808_v0  ;;  %v1805_v2 = vpop.xlane.xlu0 %1804 }
 0xd5c   :  { %v1809_v3 = vmul.f32 0.03125, %v1805_v2 }
 0xd5d   :  { %v1812_v4 = vadd.f32 1e-05, %v1810_v1 }
 0xd5e   :  { %v1811_v6 = vadd.f32 1e-05, %v1809_v3 }
 0xd5f   :  { %2405 = vrsqrt.f32 %v1812_v4 }
 0xd60   :  { %2407 = vrsqrt.f32 %v1811_v6 }
 0xd69   :  { %v2406_v14 = vpop.eup %2405 }
 0xd6a   :  { %v2408_v15 = vpop.eup %2407  ;;  %v1816_v18 = vmul.f32 %v2406_v14, %v1800_v45 }
 0xd6b   :  { %v1815_v8 = vmul.f32 %v2408_v15, %v1799_v46 }
 0xd6c   :  { %v1822_v20 = vmul.f32 %v1820_v13, %v1816_v18 }
 0xd6d   :  { %v1821_v21 = vmul.f32 %v1820_v13, %v1815_v8 }
 0xd6e   :  { %v1828_v23 = vadd.f32 %v1826_v19, %v1822_v20 }
 0xd6f   :  { %v1827_v22 = vadd.f32 %v1826_v19, %v1821_v21 }
 0xd71   :  { %2296 = vmatprep.mubr.msk.f32.mxu1 %vm49_vm0, %v1827_v22 }
 0xd72   :  { %2297 = vmatmul.mubr.msk.f32.vlgmr.msra.gmra.mrb[22].mxu1 %vm49_vm0, %v1828_v23 }
 0xe45   :  { %v2298_v28 = vpop.f32.mrb[22].mxu1 }
 0xe46   :  { %v1915_v29 = vadd.f32 %v2298_v28, %v1836_v27  ;;  %v1909_v30 = vpop.f32.mrb[23].mxu1 }
 0xe47   :  { %v1910_v17 = vadd.f32 %v1909_v30, %v1836_v27 }
 0xe48   :  { %v1919_v32 = vmax.f32 %v1915_v29, 0.0 }
 0xe49   :  { %v1918_v31 = vmax.f32 %v1910_v17, 0.0 }
 0xe4b   :  { %2315 = vmatprep.mubr.msk.f32.mxu0 %vm1932_vm3, %v1918_v31 }
 0xe4c   :  { %2316 = vmatmul.mubr.msk.f32.vlgmr.msra.gmra.mrb[14].mxu0 %vm1932_vm3, %v1919_v32 }
 0xf1f   :  { %v2317_v35 = vpop.f32.mrb[14].mxu0 }
 0xf20   :  { %v2011_v36 = vadd.f32 %v2317_v35, %v1931_v34  ;;  %v2005_v37 = vpop.f32.mrb[15].mxu0 }
 0xf21   :  { %v2006_v38 = vadd.f32 %v2005_v37, %v1931_v34 }
 0xf22   :  { %v2015_v39 = vadd.f32 %v2011_v36, %v1828_v23 }
 0xf23   :  { %v2014_v40 = vadd.f32 %v2006_v38, %v1827_v22 }
 0xf24   :  { %v2019_v41 = vsel %vm49_vm0, %v2015_v39, 0.0 }
 0xf25   :  { %2020 = vadd.xlane.f32.xlu1 %v2019_v41  ;;  %v2016_v42 = vsel %vm49_vm0, %v2014_v40, 0.0 }
 0xf26   :  { %2017 = vadd.xlane.f32.xlu0 %v2016_v42 }
 0xfb2   :  { %v2021_v43 = vpop.xlane.xlu1 %2020 }
 0xfb3   :  { %v2023_v44 = vmul.f32 0.03125, %v2021_v43  ;;  %v2018_v45 = vpop.xlane.xlu0 %2017 }
 0xfb4   :  { %v2022_v46 = vmul.f32 0.03125, %v2018_v45 }
 0xfb5   :  { %v2025_v47 = vsub.f32 %v2015_v39, %v2023_v44 }
 0xfb6   :  { %v2024_v48 = vsub.f32 %v2014_v40, %v2022_v46 }
 0xfb7   :  { %v2027_v49 = vmul.f32 %v2025_v47, %v2025_v47 }
 0xfb8   :  { %v2026_v7 = vmul.f32 %v2024_v48, %v2024_v48 }
 0xfb9   :  { %v2031_v5 = vsel %vm49_vm0, %v2027_v49, 0.0 }
 0xfba   :  { %2032 = vadd.xlane.f32.xlu1 %v2031_v5  ;;  %v2028_v50 = vsel %vm49_vm0, %v2026_v7, 0.0 }
 0xfbb   :  { %2029 = vadd.xlane.f32.xlu0 %v2028_v50 }
0x1047   :  { %v2033_v51 = vpop.xlane.xlu1 %2032 }
0x1048   :  { %v2035_v52 = vmul.f32 0.03125, %v2033_v51  ;;  %v2030_v53 = vpop.xlane.xlu0 %2029 }
0x1049   :  { %v2034_v54 = vmul.f32 0.03125, %v2030_v53 }
0x104a   :  { %v2037_v55 = vadd.f32 1e-05, %v2035_v52 }
0x104b   :  { %v2036_v56 = vadd.f32 1e-05, %v2034_v54 }
0x104c   :  { %2409 = vrsqrt.f32 %v2037_v55 }
0x104d   :  { %2411 = vrsqrt.f32 %v2036_v56 }
0x1056   :  { %v2410_v60 = vpop.eup %2409 }
0x1057   :  { %v2412_v61 = vpop.eup %2411  ;;  %v2041_v62 = vmul.f32 %v2410_v60, %v2025_v47 }
0x1058   :  { %v2040_v0 = vmul.f32 %v2412_v61, %v2024_v48 }
0x1059   :  { %v2047_v1 = vmul.f32 %v2045_v59, %v2041_v62 }
0x105a   :  { %v2046_v2 = vmul.f32 %v2045_v59, %v2040_v0 }
0x105b   :  { %v2053_v3 = vadd.f32 %v2051_v63, %v2047_v1 }
0x105c   :  { %v2052_v4 = vadd.f32 %v2051_v63, %v2046_v2 }
0x105d   :  { %2055 = vst.msk [vmem:[#allocation5 + $0x8] sm:$0xff] %vm49_vm0, %v2053_v3 }
0x105e   :  { %2054 = vst.msk [vmem:[#allocation5] sm:$0xff] %vm49_vm0, %v2052_v4 }
0x105f   :  { %2446 = shalt.err (!%p2443_p12)
}
0x1060   :  { %s2447_s15 = scalar_lea.hbm %s2788_s6, 256 }
0x1061   :  { %p2448_p13 = scmp.ne.s32.totalorder %s2788_s6, %s2447_s15  ;;  %p2451_p0 = scmp.lt.u32.totalorder %s2447_s15, %s2788_s6 }
0x1063   :  { %p2453_p1 = pnand %p2451_p0, %p2448_p13 }
0x1065   :  { %2456 = shalt.err (!%p2453_p1)
}
0x1066   :  { %2067 = dma.vmem_to_hbm [thread:$0]  %s2062_s12, 256, %s2788_s6, [#allocation4], %s2462_s7, %s2462_s7, %s2463_s8  }
0x1067   :  { %2459 = dma.done.wait [#allocation4], 256  }
0x1068   :  { %2460 = vsyncadd [#allocation4], 4294967040 }
0x1069   :  { %2071 = vsyncpa [#allocation3], 1 }
0x106a   :  { %2072 = vsyncpa [#allocation4], 1 }

</bundles_post_ra>
